<compile_context>
chip_gen: v7x
topology: tpu7x:2x2x1
jax: 0.10.0
libtpu: 0.0.40
codegen_flags: <defaults>
</compile_context>

<pallas_src>
import jax
import jax.numpy as jnp
from jax.experimental import pallas as pl
from jax.experimental.pallas import tpu as pltpu


def _edge_kernel(feats_ref, neigh_ref, valid_ref,
                 w1s_ref, w1n_ref, b1_ref,
                 w2_ref, b2_ref,
                 vexp_ref, w3_ref, b3_ref,
                 out_ref):
    """One row-tile of the fused edge MLP + masked K-reduction.

    TM = rows/tile, K = neighbors, C = c_in, H1/H2 = hidden, O = c_out.
      feats_ref (TM, C)          self features
      neigh_ref (TM, K*C)        gathered neighbor features, K packed on lanes
      valid_ref (TM, K)          0/1 neighbor mask (f32)
      w1s_ref   (C,    K*H1)     W1[:C]  lane-tiled K times
      w1n_ref   (K*C,  K*H1)     W1[C:]  block-diagonal (kron(I_K, .))
      b1_ref    (1,    K*H1)
      w2_ref    (K*H1, K*H2)     W2 block-diagonal
      b2_ref    (1,    K*H2)
      vexp_ref  (K,    K*H2)     kron(I_K, ones(1,H2)): broadcasts v over H2 lanes
      w3_ref    (K*H2, O)        W3 stacked K times (K-sum folded into the dot)
      b3_ref    (1,    O)
      out_ref   (TM, O) or lane-dense (TM//8, 8*O)
    """
    f32 = jnp.float32
    cdt = w2_ref.dtype                           # matmul input dtype (f32 / bf16)

    f = feats_ref[...]                           # (TM, C)
    n = neigh_ref[...]                           # (TM, K*C)
    v = valid_ref[...]                           # (TM, K) f32

    # Layer 1: pairs @ W1 == f @ W1[:C] + n_k @ W1[C:], kept K-packed on lanes.
    h = jnp.dot(f, w1s_ref[...], preferred_element_type=f32)
    h = h + jnp.dot(n, w1n_ref[...], preferred_element_type=f32)
    h = jnp.maximum(h + b1_ref[...], 0.0)        # (TM, K*H1) f32

    # Layer 2: block-diagonal W2 keeps the packed layout (256-wide contraction).
    h = jnp.dot(h.astype(cdt), w2_ref[...], preferred_element_type=f32)
    h = jnp.maximum(h + b2_ref[...], 0.0)        # (TM, K*H2) f32

    # Masked K-reduction folded into layer 3:
    #   out = sum_k v_k*(h_k @ W3 + b3) = (sum_k v_k*h_k) @ W3 + (sum_k v_k)*b3
    v_exp = jnp.dot(v, vexp_ref[...], preferred_element_type=f32)    # (TM, K*H2)
    red = (h * v_exp).astype(cdt)
    out = jnp.dot(red, w3_ref[...], preferred_element_type=f32)      # (TM, O)
    out = out + jnp.sum(v, axis=-1, keepdims=True) * b3_ref[...]

    if out_ref.shape[0] == f.shape[0]:           # plain (TM, O) store
        out_ref[...] = out.astype(out_ref.dtype)
    else:                                        # lane-dense (TM//8, 8*O) slab
        out_ref[...] = out.reshape(out_ref.shape).astype(out_ref.dtype)


def interaction_network_neighborhood(feats, n_idxs, valid, params, *,
                                     tile_m=512,
                                     compute_dtype=jnp.float32,
                                     pack_output=True):
    """feats (B,N,C) f32; n_idxs (B,N,K) int32; valid (B,N,K) {0,1}.

    params = (w1 (2C,H1), b1, w2 (H1,H2), b2, w3 (H2,O), b3). Returns (B,N,O) f32.
    """
    B, N, C = feats.shape
    K = n_idxs.shape[-1]
    w1, b1, w2, b2, w3, b3 = params
    H1, H2, c_out = w1.shape[-1], w2.shape[-1], w3.shape[-1]
    cdt = compute_dtype
    f32 = jnp.float32

    b1 = jnp.asarray(b1, f32).reshape(1, H1)
    b2 = jnp.asarray(b2, f32).reshape(1, H2)
    b3 = jnp.asarray(b3, f32).reshape(1, c_out)

    # ---- One-time weight prep (plain JAX): split W1, K-pack via kron/tile. ----
    eye_k = jnp.eye(K, dtype=f32)
    w1s_rep = jnp.tile(jnp.asarray(w1[:C], f32), (1, K)).astype(cdt)     # (C, K*H1)
    w1n_blk = jnp.kron(eye_k, jnp.asarray(w1[C:], f32)).astype(cdt)      # (K*C, K*H1)
    b1_rep = jnp.tile(b1, (1, K))                                        # (1, K*H1)
    w2_blk = jnp.kron(eye_k, jnp.asarray(w2, f32)).astype(cdt)           # (K*H1, K*H2)
    b2_rep = jnp.tile(b2, (1, K))                                        # (1, K*H2)
    vexp_m = jnp.kron(eye_k, jnp.ones((1, H2), f32))                     # (K, K*H2)
    w3_stk = jnp.tile(jnp.asarray(w3, f32), (K, 1)).astype(cdt)          # (K*H2, O)

    # ---- Neighbor gather (glue, == feats[bb, n_idxs]) + lane-dense packing. ----
    # TODO(synk): fuse the gather in-kernel (VMEM-resident feats + dynamic gather
    # or manual DMA) to drop the K-x HBM amplification of feats; kept in XLA here.
    feats_c = feats.astype(cdt)
    bb = jnp.arange(B)[:, None, None]
    neigh = feats_c[bb, n_idxs]                                          # (B,N,K,C)

    BN = B * N
    feats_flat = feats_c.reshape(BN, C)
    neigh_flat = neigh.reshape(BN, K * C)
    valid_flat = valid.reshape(BN, K).astype(f32)

    # ---- Tiling: big tiles; pad BN instead of asserting divisibility. ----
    tile_m = max(64, (int(tile_m) // 64) * 64)  # mult of 64 -> packed-out block obeys (8,128)
    if BN <= tile_m:
        tile_m = -(-BN // 8) * 8                # single tile covering all (padded) rows
    BN_pad = -(-BN // tile_m) * tile_m
    if BN_pad != BN:
        pad = ((0, BN_pad - BN), (0, 0))
        feats_flat = jnp.pad(feats_flat, pad)
        neigh_flat = jnp.pad(neigh_flat, pad)
        valid_flat = jnp.pad(valid_flat, pad)   # valid == 0 -> padded rows give 0
    grid = (BN_pad // tile_m,)

    if pack_output:
        out_shape = jax.ShapeDtypeStruct((BN_pad // 8, 8 * c_out), f32)
        out_spec = pl.BlockSpec((tile_m // 8, 8 * c_out), lambda i: (i, 0))
    else:
        out_shape = jax.ShapeDtypeStruct((BN_pad, c_out), f32)
        out_spec = pl.BlockSpec((tile_m, c_out), lambda i: (i, 0))

    def _full(arr):  # grid-invariant operand: whole array every step
        return pl.BlockSpec(arr.shape, lambda i: (0, 0))

    out = pl.pallas_call(
        _edge_kernel,
        out_shape=out_shape,
        grid_spec=pltpu.PrefetchScalarGridSpec(
            num_scalar_prefetch=0,
            grid=grid,
            in_specs=[
                pl.BlockSpec((tile_m, C), lambda i: (i, 0)),
                pl.BlockSpec((tile_m, K * C), lambda i: (i, 0)),
                pl.BlockSpec((tile_m, K), lambda i: (i, 0)),
                _full(w1s_rep), _full(w1n_blk), _full(b1_rep),
                _full(w2_blk), _full(b2_rep),
                _full(vexp_m), _full(w3_stk), _full(b3),
            ],
            out_specs=out_spec,
        ),
        compiler_params=pltpu.CompilerParams(
            dimension_semantics=("parallel",),
            vmem_limit_bytes=32 * 1024 * 1024),
    )(feats_flat, neigh_flat, valid_flat,
      w1s_rep, w1n_blk, b1_rep, w2_blk, b2_rep, vexp_m, w3_stk, b3)

    out = out.reshape(BN_pad, c_out)[:BN]
    return out.reshape(B, N, c_out)


def _reference(feats, n_idxs, valid, params):
    """Pure-JAX reference matching the PyTorch forward (f32 everywhere)."""
    w1, b1, w2, b2, w3, b3 = params
    B, N, C = feats.shape
    K = n_idxs.shape[-1]
    bb = jnp.arange(B)[:, None, None]
    neighbor_feats = feats[bb, n_idxs]                                  # (B,N,K,C)
    exp_feats = jnp.broadcast_to(feats[:, :, None, :], (B, N, K, C))
    pairs = jnp.concatenate([exp_feats, neighbor_feats], axis=-1)       # (B,N,K,2C)
    h = jnp.maximum(pairs @ w1 + b1.reshape(-1), 0.0)
    h = jnp.maximum(h @ w2 + b2.reshape(-1), 0.0)
    edges = h @ w3 + b3.reshape(-1)
    masked = edges * valid[..., None]
    return masked.sum(axis=2)


if __name__ == "__main__":
    # Small shapes consistent with the module: neighbors=8, c_in=4,
    # edge_hidden=(32, 32), c_out=16, key_feats='self'.
    B, N, C, K = 2, 16, 4, 8
    H1, H2, COUT = 32, 32, 16

    key = jax.random.PRNGKey(0)
    k_feat, k_idx, k_val, k1, k2, k3, k4, k5, k6 = jax.random.split(key, 9)

    feats = jax.random.normal(k_feat, (B, N, C), dtype=jnp.float32)
    n_idxs = jax.random.randint(k_idx, (B, N, K), 0, N, dtype=jnp.int32)
    valid = (jax.random.uniform(k_val, (B, N, K)) > 0.2).astype(jnp.float32)

    w1 = jax.random.normal(k1, (2 * C, H1), dtype=jnp.float32) * 0.1
    b1 = jax.random.normal(k2, (1, H1), dtype=jnp.float32) * 0.1
    w2 = jax.random.normal(k3, (H1, H2), dtype=jnp.float32) * 0.1
    b2 = jax.random.normal(k4, (1, H2), dtype=jnp.float32) * 0.1
    w3 = jax.random.normal(k5, (H2, COUT), dtype=jnp.float32) * 0.1
    b3 = jax.random.normal(k6, (1, COUT), dtype=jnp.float32) * 0.1
    params = (w1, b1, w2, b2, w3, b3)

    ref = _reference(feats, n_idxs, valid, params)

    # Preferred path: lane-dense packed store.  If this Mosaic build rejects the
    # minor-dim repack reshape, fall back to the plain (correct) store.
    pack = True
    try:
        out = jax.block_until_ready(
            interaction_network_neighborhood(feats, n_idxs, valid, params,
                                             compute_dtype=jnp.float32,
                                             pack_output=True))
    except Exception:
        pack = False
        out = jax.block_until_ready(
            interaction_network_neighborhood(feats, n_idxs, valid, params,
                                             compute_dtype=jnp.float32,
                                             pack_output=False))
    assert out.shape == (B, N, COUT)
    assert jnp.allclose(out, ref, atol=1e-4, rtol=1e-4), "f32 mismatch vs reference"

    # bf16 inputs/weights with f32 accumulation (halves the dominant HBM streams).
    out_bf16 = jax.block_until_ready(
        interaction_network_neighborhood(feats, n_idxs, valid, params,
                                         compute_dtype=jnp.bfloat16,
                                         pack_output=pack))
    assert jnp.allclose(out_bf16, ref, atol=5e-2, rtol=5e-2), "bf16 mismatch vs reference"

    # Multi-tile + ragged-BN path (exercises wrapper padding and grid > 1).
    B2, N2 = 4, 200            # BN = 800 -> padded to 1024 with tile_m = 512, grid = (2,)
    kf, ki, kv = jax.random.split(jax.random.PRNGKey(1), 3)
    feats2 = jax.random.normal(kf, (B2, N2, C), dtype=jnp.float32)
    n_idxs2 = jax.random.randint(ki, (B2, N2, K), 0, N2, dtype=jnp.int32)
    valid2 = (jax.random.uniform(kv, (B2, N2, K)) > 0.2).astype(jnp.float32)
    out2 = jax.block_until_ready(
        interaction_network_neighborhood(feats2, n_idxs2, valid2, params,
                                         compute_dtype=jnp.float32,
                                         pack_output=pack))
    ref2 = _reference(feats2, n_idxs2, valid2, params)
    assert jnp.allclose(out2, ref2, atol=1e-4, rtol=1e-4), "multi-tile mismatch vs reference"

    print("KERNEL_OK")
</pallas_src>

<mosaic_0001>
module attributes {stable_mosaic.version = 11 : i64} {
  func.func @_edge_kernel(%arg0: i32, %arg1: memref<32x4xf32, #tpu.memory_space<vmem>>, %arg2: memref<32x32xf32, #tpu.memory_space<vmem>>, %arg3: memref<32x8xf32, #tpu.memory_space<vmem>>, %arg4: memref<4x256xf32, #tpu.memory_space<vmem>>, %arg5: memref<32x256xf32, #tpu.memory_space<vmem>>, %arg6: memref<1x256xf32, #tpu.memory_space<vmem>>, %arg7: memref<256x256xf32, #tpu.memory_space<vmem>>, %arg8: memref<1x256xf32, #tpu.memory_space<vmem>>, %arg9: memref<8x256xf32, #tpu.memory_space<vmem>>, %arg10: memref<256x16xf32, #tpu.memory_space<vmem>>, %arg11: memref<1x16xf32, #tpu.memory_space<vmem>>, %arg12: memref<4x128xf32, #tpu.memory_space<vmem>>) attributes {dimension_semantics = [#tpu.dimension_semantics<parallel>], iteration_bounds = array<i64: 1>, scalar_prefetch = 0 : i64, scratch_operands = 0 : i64, tpu.core_type = #tpu.core_type<tc>, window_params = [{transform_indices = @transform_0, window_bounds = array<i64: 32, 4>}, {transform_indices = @transform_1, window_bounds = array<i64: 32, 32>}, {transform_indices = @transform_2, window_bounds = array<i64: 32, 8>}, {pipeline_mode = #tpu.pipeline_mode<synchronous>, transform_indices = @transform_3, window_bounds = array<i64: 4, 256>}, {pipeline_mode = #tpu.pipeline_mode<synchronous>, transform_indices = @transform_4, window_bounds = array<i64: 32, 256>}, {pipeline_mode = #tpu.pipeline_mode<synchronous>, transform_indices = @transform_5, window_bounds = array<i64: 1, 256>}, {pipeline_mode = #tpu.pipeline_mode<synchronous>, transform_indices = @transform_6, window_bounds = array<i64: 256, 256>}, {pipeline_mode = #tpu.pipeline_mode<synchronous>, transform_indices = @transform_7, window_bounds = array<i64: 1, 256>}, {pipeline_mode = #tpu.pipeline_mode<synchronous>, transform_indices = @transform_8, window_bounds = array<i64: 8, 256>}, {pipeline_mode = #tpu.pipeline_mode<synchronous>, transform_indices = @transform_9, window_bounds = array<i64: 256, 16>}, {pipeline_mode = #tpu.pipeline_mode<synchronous>, transform_indices = @transform_10, window_bounds = array<i64: 1, 16>}, {transform_indices = @transform_11, window_bounds = array<i64: 4, 128>}]} {
    %c0 = arith.constant 0 : index
    %c0_0 = arith.constant 0 : index
    %0 = vector.load %arg1[%c0, %c0_0] : memref<32x4xf32, #tpu.memory_space<vmem>>, vector<32x4xf32>
    %c0_1 = arith.constant 0 : index
    %c0_2 = arith.constant 0 : index
    %1 = vector.load %arg2[%c0_1, %c0_2] : memref<32x32xf32, #tpu.memory_space<vmem>>, vector<32x32xf32>
    %c0_3 = arith.constant 0 : index
    %c0_4 = arith.constant 0 : index
    %2 = vector.load %arg3[%c0_3, %c0_4] : memref<32x8xf32, #tpu.memory_space<vmem>>, vector<32x8xf32>
    %c0_5 = arith.constant 0 : index
    %c0_6 = arith.constant 0 : index
    %3 = vector.load %arg4[%c0_5, %c0_6] : memref<4x256xf32, #tpu.memory_space<vmem>>, vector<4x256xf32>
    %cst = arith.constant dense<0.000000e+00> : vector<32x256xf32>
    %4 = tpu.matmul %0, %3, %cst {dimension_numbers = #tpu.dot_dimension_numbers<[1], [0], [0], [1], [0, 0, 1, 1], [], []>} : vector<32x4xf32>, vector<4x256xf32>, vector<32x256xf32> -> vector<32x256xf32>
    %c0_7 = arith.constant 0 : index
    %c0_8 = arith.constant 0 : index
    %5 = vector.load %arg5[%c0_7, %c0_8] : memref<32x256xf32, #tpu.memory_space<vmem>>, vector<32x256xf32>
    %cst_9 = arith.constant dense<0.000000e+00> : vector<32x256xf32>
    %6 = tpu.matmul %1, %5, %cst_9 {dimension_numbers = #tpu.dot_dimension_numbers<[1], [0], [0], [1], [0, 0, 1, 1], [], []>} : vector<32x32xf32>, vector<32x256xf32>, vector<32x256xf32> -> vector<32x256xf32>
    %7 = arith.addf %4, %6 : vector<32x256xf32>
    %c0_10 = arith.constant 0 : index
    %c0_11 = arith.constant 0 : index
    %8 = vector.load %arg6[%c0_10, %c0_11] : memref<1x256xf32, #tpu.memory_space<vmem>>, vector<1x256xf32>
    %9 = vector.broadcast %8 : vector<1x256xf32> to vector<32x256xf32>
    %10 = arith.addf %7, %9 : vector<32x256xf32>
    %cst_12 = arith.constant 0.000000e+00 : f32
    %11 = vector.broadcast %cst_12 : f32 to vector<32x256xf32>
    %12 = arith.maximumf %10, %11 : vector<32x256xf32>
    %c0_13 = arith.constant 0 : index
    %c0_14 = arith.constant 0 : index
    %13 = vector.load %arg7[%c0_13, %c0_14] : memref<256x256xf32, #tpu.memory_space<vmem>>, vector<256x256xf32>
    %cst_15 = arith.constant dense<0.000000e+00> : vector<32x256xf32>
    %14 = tpu.matmul %12, %13, %cst_15 {dimension_numbers = #tpu.dot_dimension_numbers<[1], [0], [0], [1], [0, 0, 1, 1], [], []>} : vector<32x256xf32>, vector<256x256xf32>, vector<32x256xf32> -> vector<32x256xf32>
    %c0_16 = arith.constant 0 : index
    %c0_17 = arith.constant 0 : index
    %15 = vector.load %arg8[%c0_16, %c0_17] : memref<1x256xf32, #tpu.memory_space<vmem>>, vector<1x256xf32>
    %16 = vector.broadcast %15 : vector<1x256xf32> to vector<32x256xf32>
    %17 = arith.addf %14, %16 : vector<32x256xf32>
    %cst_18 = arith.constant 0.000000e+00 : f32
    %18 = vector.broadcast %cst_18 : f32 to vector<32x256xf32>
    %19 = arith.maximumf %17, %18 : vector<32x256xf32>
    %c0_19 = arith.constant 0 : index
    %c0_20 = arith.constant 0 : index
    %20 = vector.load %arg9[%c0_19, %c0_20] : memref<8x256xf32, #tpu.memory_space<vmem>>, vector<8x256xf32>
    %cst_21 = arith.constant dense<0.000000e+00> : vector<32x256xf32>
    %21 = tpu.matmul %2, %20, %cst_21 {dimension_numbers = #tpu.dot_dimension_numbers<[1], [0], [0], [1], [0, 0, 1, 1], [], []>} : vector<32x8xf32>, vector<8x256xf32>, vector<32x256xf32> -> vector<32x256xf32>
    %22 = arith.mulf %19, %21 : vector<32x256xf32>
    %c0_22 = arith.constant 0 : index
    %c0_23 = arith.constant 0 : index
    %23 = vector.load %arg10[%c0_22, %c0_23] : memref<256x16xf32, #tpu.memory_space<vmem>>, vector<256x16xf32>
    %cst_24 = arith.constant dense<0.000000e+00> : vector<32x16xf32>
    %24 = tpu.matmul %22, %23, %cst_24 {dimension_numbers = #tpu.dot_dimension_numbers<[1], [0], [0], [1], [0, 0, 1, 1], [], []>} : vector<32x256xf32>, vector<256x16xf32>, vector<32x16xf32> -> vector<32x16xf32>
    %cst_25 = arith.constant dense<0.000000e+00> : vector<32xf32>
    %25 = vector.multi_reduction <add>, %2, %cst_25 [1] : vector<32x8xf32> to vector<32xf32>
    %26 = vector.shape_cast %25 : vector<32xf32> to vector<32x1xf32>
    %c0_26 = arith.constant 0 : index
    %c0_27 = arith.constant 0 : index
    %27 = vector.load %arg11[%c0_26, %c0_27] : memref<1x16xf32, #tpu.memory_space<vmem>>, vector<1x16xf32>
    %28 = vector.broadcast %26 : vector<32x1xf32> to vector<32x16xf32>
    %29 = vector.broadcast %27 : vector<1x16xf32> to vector<32x16xf32>
    %30 = arith.mulf %28, %29 : vector<32x16xf32>
    %31 = arith.addf %24, %30 : vector<32x16xf32>
    %32 = vector.shape_cast %31 : vector<32x16xf32> to vector<4x128xf32>
    %c0_28 = arith.constant 0 : index
    %c0_29 = arith.constant 0 : index
    %33 = vector.load %arg12[%c0_28, %c0_29] : memref<4x128xf32, #tpu.memory_space<vmem>>, vector<4x128xf32>
    tpu.vector_store %arg12[%c0_28, %c0_29], %32 {strides = array<i32>} : memref<4x128xf32, #tpu.memory_space<vmem>>, vector<4x128xf32>,
    return
  }
  func.func @transform_0(%arg0: i32) -> (i32, i32) {
    %c0_i32 = arith.constant 0 : i32
    %c0_i32_0 = arith.constant 0 : i32
    return %arg0, %c0_i32 : i32, i32
  }
  func.func @transform_1(%arg0: i32) -> (i32, i32) {
    %c0_i32 = arith.constant 0 : i32
    %c0_i32_0 = arith.constant 0 : i32
    return %arg0, %c0_i32 : i32, i32
  }
  func.func @transform_2(%arg0: i32) -> (i32, i32) {
    %c0_i32 = arith.constant 0 : i32
    %c0_i32_0 = arith.constant 0 : i32
    return %arg0, %c0_i32 : i32, i32
  }
  func.func @transform_3(%arg0: i32) -> (i32, i32) {
    %c0_i32 = arith.constant 0 : i32
    %c0_i32_0 = arith.constant 0 : i32
    %c0_i32_1 = arith.constant 0 : i32
    return %c0_i32, %c0_i32_0 : i32, i32
  }
  func.func @transform_4(%arg0: i32) -> (i32, i32) {
    %c0_i32 = arith.constant 0 : i32
    %c0_i32_0 = arith.constant 0 : i32
    %c0_i32_1 = arith.constant 0 : i32
    return %c0_i32, %c0_i32_0 : i32, i32
  }
  func.func @transform_5(%arg0: i32) -> (i32, i32) {
    %c0_i32 = arith.constant 0 : i32
    %c0_i32_0 = arith.constant 0 : i32
    %c0_i32_1 = arith.constant 0 : i32
    return %c0_i32, %c0_i32_0 : i32, i32
  }
  func.func @transform_6(%arg0: i32) -> (i32, i32) {
    %c0_i32 = arith.constant 0 : i32
    %c0_i32_0 = arith.constant 0 : i32
    %c0_i32_1 = arith.constant 0 : i32
    return %c0_i32, %c0_i32_0 : i32, i32
  }
  func.func @transform_7(%arg0: i32) -> (i32, i32) {
    %c0_i32 = arith.constant 0 : i32
    %c0_i32_0 = arith.constant 0 : i32
    %c0_i32_1 = arith.constant 0 : i32
    return %c0_i32, %c0_i32_0 : i32, i32
  }
  func.func @transform_8(%arg0: i32) -> (i32, i32) {
    %c0_i32 = arith.constant 0 : i32
    %c0_i32_0 = arith.constant 0 : i32
    %c0_i32_1 = arith.constant 0 : i32
    return %c0_i32, %c0_i32_0 : i32, i32
  }
  func.func @transform_9(%arg0: i32) -> (i32, i32) {
    %c0_i32 = arith.constant 0 : i32
    %c0_i32_0 = arith.constant 0 : i32
    %c0_i32_1 = arith.constant 0 : i32
    return %c0_i32, %c0_i32_0 : i32, i32
  }
  func.func @transform_10(%arg0: i32) -> (i32, i32) {
    %c0_i32 = arith.constant 0 : i32
    %c0_i32_0 = arith.constant 0 : i32
    %c0_i32_1 = arith.constant 0 : i32
    return %c0_i32, %c0_i32_0 : i32, i32
  }
  func.func @transform_11(%arg0: i32) -> (i32, i32) {
    %c0_i32 = arith.constant 0 : i32
    %c0_i32_0 = arith.constant 0 : i32
    return %arg0, %c0_i32 : i32, i32
  }
}

module attributes {stable_mosaic.version = 11 : i64} {
  func.func @_edge_kernel(%arg0: i32, %arg1: memref<32x4xf32, #tpu.memory_space<vmem>>, %arg2: memref<32x32xf32, #tpu.memory_space<vmem>>, %arg3: memref<32x8xf32, #tpu.memory_space<vmem>>, %arg4: memref<4x256xf32, #tpu.memory_space<vmem>>, %arg5: memref<32x256xf32, #tpu.memory_space<vmem>>, %arg6: memref<1x256xf32, #tpu.memory_space<vmem>>, %arg7: memref<256x256xf32, #tpu.memory_space<vmem>>, %arg8: memref<1x256xf32, #tpu.memory_space<vmem>>, %arg9: memref<8x256xf32, #tpu.memory_space<vmem>>, %arg10: memref<256x16xf32, #tpu.memory_space<vmem>>, %arg11: memref<1x16xf32, #tpu.memory_space<vmem>>, %arg12: memref<32x16xf32, #tpu.memory_space<vmem>>) attributes {dimension_semantics = [#tpu.dimension_semantics<parallel>], iteration_bounds = array<i64: 1>, scalar_prefetch = 0 : i64, scratch_operands = 0 : i64, tpu.core_type = #tpu.core_type<tc>, window_params = [{transform_indices = @transform_0, window_bounds = array<i64: 32, 4>}, {transform_indices = @transform_1, window_bounds = array<i64: 32, 32>}, {transform_indices = @transform_2, window_bounds = array<i64: 32, 8>}, {pipeline_mode = #tpu.pipeline_mode<synchronous>, transform_indices = @transform_3, window_bounds = array<i64: 4, 256>}, {pipeline_mode = #tpu.pipeline_mode<synchronous>, transform_indices = @transform_4, window_bounds = array<i64: 32, 256>}, {pipeline_mode = #tpu.pipeline_mode<synchronous>, transform_indices = @transform_5, window_bounds = array<i64: 1, 256>}, {pipeline_mode = #tpu.pipeline_mode<synchronous>, transform_indices = @transform_6, window_bounds = array<i64: 256, 256>}, {pipeline_mode = #tpu.pipeline_mode<synchronous>, transform_indices = @transform_7, window_bounds = array<i64: 1, 256>}, {pipeline_mode = #tpu.pipeline_mode<synchronous>, transform_indices = @transform_8, window_bounds = array<i64: 8, 256>}, {pipeline_mode = #tpu.pipeline_mode<synchronous>, transform_indices = @transform_9, window_bounds = array<i64: 256, 16>}, {pipeline_mode = #tpu.pipeline_mode<synchronous>, transform_indices = @transform_10, window_bounds = array<i64: 1, 16>}, {transform_indices = @transform_11, window_bounds = array<i64: 32, 16>}]} {
    %c0 = arith.constant 0 : index
    %c0_0 = arith.constant 0 : index
    %0 = vector.load %arg1[%c0, %c0_0] : memref<32x4xf32, #tpu.memory_space<vmem>>, vector<32x4xf32>
    %c0_1 = arith.constant 0 : index
    %c0_2 = arith.constant 0 : index
    %1 = vector.load %arg2[%c0_1, %c0_2] : memref<32x32xf32, #tpu.memory_space<vmem>>, vector<32x32xf32>
    %c0_3 = arith.constant 0 : index
    %c0_4 = arith.constant 0 : index
    %2 = vector.load %arg3[%c0_3, %c0_4] : memref<32x8xf32, #tpu.memory_space<vmem>>, vector<32x8xf32>
    %c0_5 = arith.constant 0 : index
    %c0_6 = arith.constant 0 : index
    %3 = vector.load %arg4[%c0_5, %c0_6] : memref<4x256xf32, #tpu.memory_space<vmem>>, vector<4x256xf32>
    %cst = arith.constant dense<0.000000e+00> : vector<32x256xf32>
    %4 = tpu.matmul %0, %3, %cst {dimension_numbers = #tpu.dot_dimension_numbers<[1], [0], [0], [1], [0, 0, 1, 1], [], []>} : vector<32x4xf32>, vector<4x256xf32>, vector<32x256xf32> -> vector<32x256xf32>
    %c0_7 = arith.constant 0 : index
    %c0_8 = arith.constant 0 : index
    %5 = vector.load %arg5[%c0_7, %c0_8] : memref<32x256xf32, #tpu.memory_space<vmem>>, vector<32x256xf32>
    %cst_9 = arith.constant dense<0.000000e+00> : vector<32x256xf32>
    %6 = tpu.matmul %1, %5, %cst_9 {dimension_numbers = #tpu.dot_dimension_numbers<[1], [0], [0], [1], [0, 0, 1, 1], [], []>} : vector<32x32xf32>, vector<32x256xf32>, vector<32x256xf32> -> vector<32x256xf32>
    %7 = arith.addf %4, %6 : vector<32x256xf32>
    %c0_10 = arith.constant 0 : index
    %c0_11 = arith.constant 0 : index
    %8 = vector.load %arg6[%c0_10, %c0_11] : memref<1x256xf32, #tpu.memory_space<vmem>>, vector<1x256xf32>
    %9 = vector.broadcast %8 : vector<1x256xf32> to vector<32x256xf32>
    %10 = arith.addf %7, %9 : vector<32x256xf32>
    %cst_12 = arith.constant 0.000000e+00 : f32
    %11 = vector.broadcast %cst_12 : f32 to vector<32x256xf32>
    %12 = arith.maximumf %10, %11 : vector<32x256xf32>
    %c0_13 = arith.constant 0 : index
    %c0_14 = arith.constant 0 : index
    %13 = vector.load %arg7[%c0_13, %c0_14] : memref<256x256xf32, #tpu.memory_space<vmem>>, vector<256x256xf32>
    %cst_15 = arith.constant dense<0.000000e+00> : vector<32x256xf32>
    %14 = tpu.matmul %12, %13, %cst_15 {dimension_numbers = #tpu.dot_dimension_numbers<[1], [0], [0], [1], [0, 0, 1, 1], [], []>} : vector<32x256xf32>, vector<256x256xf32>, vector<32x256xf32> -> vector<32x256xf32>
    %c0_16 = arith.constant 0 : index
    %c0_17 = arith.constant 0 : index
    %15 = vector.load %arg8[%c0_16, %c0_17] : memref<1x256xf32, #tpu.memory_space<vmem>>, vector<1x256xf32>
    %16 = vector.broadcast %15 : vector<1x256xf32> to vector<32x256xf32>
    %17 = arith.addf %14, %16 : vector<32x256xf32>
    %cst_18 = arith.constant 0.000000e+00 : f32
    %18 = vector.broadcast %cst_18 : f32 to vector<32x256xf32>
    %19 = arith.maximumf %17, %18 : vector<32x256xf32>
    %c0_19 = arith.constant 0 : index
    %c0_20 = arith.constant 0 : index
    %20 = vector.load %arg9[%c0_19, %c0_20] : memref<8x256xf32, #tpu.memory_space<vmem>>, vector<8x256xf32>
    %cst_21 = arith.constant dense<0.000000e+00> : vector<32x256xf32>
    %21 = tpu.matmul %2, %20, %cst_21 {dimension_numbers = #tpu.dot_dimension_numbers<[1], [0], [0], [1], [0, 0, 1, 1], [], []>} : vector<32x8xf32>, vector<8x256xf32>, vector<32x256xf32> -> vector<32x256xf32>
    %22 = arith.mulf %19, %21 : vector<32x256xf32>
    %c0_22 = arith.constant 0 : index
    %c0_23 = arith.constant 0 : index
    %23 = vector.load %arg10[%c0_22, %c0_23] : memref<256x16xf32, #tpu.memory_space<vmem>>, vector<256x16xf32>
    %cst_24 = arith.constant dense<0.000000e+00> : vector<32x16xf32>
    %24 = tpu.matmul %22, %23, %cst_24 {dimension_numbers = #tpu.dot_dimension_numbers<[1], [0], [0], [1], [0, 0, 1, 1], [], []>} : vector<32x256xf32>, vector<256x16xf32>, vector<32x16xf32> -> vector<32x16xf32>
    %cst_25 = arith.constant dense<0.000000e+00> : vector<32xf32>
    %25 = vector.multi_reduction <add>, %2, %cst_25 [1] : vector<32x8xf32> to vector<32xf32>
    %26 = vector.shape_cast %25 : vector<32xf32> to vector<32x1xf32>
    %c0_26 = arith.constant 0 : index
    %c0_27 = arith.constant 0 : index
    %27 = vector.load %arg11[%c0_26, %c0_27] : memref<1x16xf32, #tpu.memory_space<vmem>>, vector<1x16xf32>
    %28 = vector.broadcast %26 : vector<32x1xf32> to vector<32x16xf32>
    %29 = vector.broadcast %27 : vector<1x16xf32> to vector<32x16xf32>
    %30 = arith.mulf %28, %29 : vector<32x16xf32>
    %31 = arith.addf %24, %30 : vector<32x16xf32>
    %c0_28 = arith.constant 0 : index
    %c0_29 = arith.constant 0 : index
    %32 = vector.load %arg12[%c0_28, %c0_29] : memref<32x16xf32, #tpu.memory_space<vmem>>, vector<32x16xf32>
    tpu.vector_store %arg12[%c0_28, %c0_29], %31 {strides = array<i32>} : memref<32x16xf32, #tpu.memory_space<vmem>>, vector<32x16xf32>,
    return
  }
  func.func @transform_0(%arg0: i32) -> (i32, i32) {
    %c0_i32 = arith.constant 0 : i32
    %c0_i32_0 = arith.constant 0 : i32
    return %arg0, %c0_i32 : i32, i32
  }
  func.func @transform_1(%arg0: i32) -> (i32, i32) {
    %c0_i32 = arith.constant 0 : i32
    %c0_i32_0 = arith.constant 0 : i32
    return %arg0, %c0_i32 : i32, i32
  }
  func.func @transform_2(%arg0: i32) -> (i32, i32) {
    %c0_i32 = arith.constant 0 : i32
    %c0_i32_0 = arith.constant 0 : i32
    return %arg0, %c0_i32 : i32, i32
  }
  func.func @transform_3(%arg0: i32) -> (i32, i32) {
    %c0_i32 = arith.constant 0 : i32
    %c0_i32_0 = arith.constant 0 : i32
    %c0_i32_1 = arith.constant 0 : i32
    return %c0_i32, %c0_i32_0 : i32, i32
  }
  func.func @transform_4(%arg0: i32) -> (i32, i32) {
    %c0_i32 = arith.constant 0 : i32
    %c0_i32_0 = arith.constant 0 : i32
    %c0_i32_1 = arith.constant 0 : i32
    return %c0_i32, %c0_i32_0 : i32, i32
  }
  func.func @transform_5(%arg0: i32) -> (i32, i32) {
    %c0_i32 = arith.constant 0 : i32
    %c0_i32_0 = arith.constant 0 : i32
    %c0_i32_1 = arith.constant 0 : i32
    return %c0_i32, %c0_i32_0 : i32, i32
  }
  func.func @transform_6(%arg0: i32) -> (i32, i32) {
    %c0_i32 = arith.constant 0 : i32
    %c0_i32_0 = arith.constant 0 : i32
    %c0_i32_1 = arith.constant 0 : i32
    return %c0_i32, %c0_i32_0 : i32, i32
  }
  func.func @transform_7(%arg0: i32) -> (i32, i32) {
    %c0_i32 = arith.constant 0 : i32
    %c0_i32_0 = arith.constant 0 : i32
    %c0_i32_1 = arith.constant 0 : i32
    return %c0_i32, %c0_i32_0 : i32, i32
  }
  func.func @transform_8(%arg0: i32) -> (i32, i32) {
    %c0_i32 = arith.constant 0 : i32
    %c0_i32_0 = arith.constant 0 : i32
    %c0_i32_1 = arith.constant 0 : i32
    return %c0_i32, %c0_i32_0 : i32, i32
  }
  func.func @transform_9(%arg0: i32) -> (i32, i32) {
    %c0_i32 = arith.constant 0 : i32
    %c0_i32_0 = arith.constant 0 : i32
    %c0_i32_1 = arith.constant 0 : i32
    return %c0_i32, %c0_i32_0 : i32, i32
  }
  func.func @transform_10(%arg0: i32) -> (i32, i32) {
    %c0_i32 = arith.constant 0 : i32
    %c0_i32_0 = arith.constant 0 : i32
    %c0_i32_1 = arith.constant 0 : i32
    return %c0_i32, %c0_i32_0 : i32, i32
  }
  func.func @transform_11(%arg0: i32) -> (i32, i32) {
    %c0_i32 = arith.constant 0 : i32
    %c0_i32_0 = arith.constant 0 : i32
    return %arg0, %c0_i32 : i32, i32
  }
}

</mosaic_0001>

<bundles_post_ra>
// kernel: tpu_custom_call.1
= control target key start
LH: loop header
LB: loop body
LE: loop exit
PB: predicated region body
PF: predicated region fallthrough
CT: control target
= control target key end

     0   :  { %16 = vsyncpa [#allocation3], 0  ;;  %s947_s17 = smov [#allocation2]   ;;  %s1269_s0 = inlined_call_operand.vmem [shape: f32[32,4], index: 0, kind: input, shape index: {}]   ;;  %s1270_s1 = inlined_call_operand.vmem [shape: f32[32,32], index: 1, kind: input, shape index: {}]   ;;  %s1271_s2 = inlined_call_operand.vmem [shape: f32[32,8], index: 2, kind: input, shape index: {}]   ;;  %s1272_s3 = inlined_call_operand.vmem [shape: f32[4,256], index: 3, kind: input, shape index: {}]   ;;  %s1273_s4 = inlined_call_operand.vmem [shape: f32[32,256], index: 4, kind: input, shape index: {}]   ;;  %s1274_s5 = inlined_call_operand.vmem [shape: f32[1,256], index: 5, kind: input, shape index: {}]   ;;  %s1275_s6 = inlined_call_operand.hbm [shape: f32[256,256], index: 6, kind: input, shape index: {}]   ;;  %s1276_s7 = inlined_call_operand.vmem [shape: f32[1,256], index: 7, kind: input, shape index: {}]   ;;  %s1277_s8 = inlined_call_operand.vmem [shape: f32[8,256], index: 8, kind: input, shape index: {}]   ;;  %s1278_s9 = inlined_call_operand.vmem [shape: f32[256,16], index: 9, kind: input, shape index: {}]   ;;  %s1279_s10 = inlined_call_operand.vmem [shape: f32[1,16], index: 10, kind: input, shape index: {}]   ;;  %s1280_s11 = inlined_call_operand.vmem [shape: f32[32,16], index: 11, kind: output, shape index: {}]  }
   0x1   :  { %s34_s18 = sshll.u32 %s947_s17, 4  ;;  %s923_s21 = scalar_lea.hbm %s1275_s6, 8192  ;;  %s35_s18 = int_to_ptr.vmem [resolvable:$true] %s34_s18 }
   0x2   :  { %p924_p0 = scmp.ne.s32.totalorder %s1275_s6, %s923_s21  ;;  %p927_p1 = scmp.lt.u32.totalorder %s923_s21, %s1275_s6 }
   0x4   :  { %p929_p2 = pnand %p927_p1, %p924_p0 }
   0x6   :  { %932 = shalt.err (!%p929_p2)
}
   0x7   :  { %s933_s26 = scalar_lea.vmem %s35_s18, 8192  ;;  %p938_p4 = scmp.lt.s32.totalorder %s35_s18, %s35_s18 }
   0x8   :  { %p934_p3 = scmp.ne.s32.totalorder %s35_s18, %s933_s26  ;;  %p939_p5 = scmp.lt.s32.totalorder %s933_s26, %s933_s26 }
   0xa   :  { %p940_p6 = por %p939_p5, %p938_p4 }
   0xc   :  { %p941_p7 = pnand %p940_p6, %p934_p3 }
   0xe   :  { %944 = shalt.err (!%p941_p7)
}
   0xf   :  { %s948_s27 = smov 256   ;;  %s949_s28 = smov 16  }
  0x10   :  { %40 = dma.hbm_to_vmem [thread:$0]  %s1275_s6, 8192, %s35_s18, [#allocation3], %s948_s27, %s948_s27, %s949_s28  }
  0x11   :  { %945 = dma.done.wait [#allocation3], 8192  }
  0x12   :  { %946 = vsyncadd [#allocation3], 4294959104  ;;  %v950_v0 = vmov 0.0   ;;  %v66_v1 = vld [vmem:[%s1273_s4 + $0x8] sm:$0xff]  ;;  %v68_v2 = vld [vmem:[%s1273_s4 + $0x18] sm:$0xff]  ;;  %vm190_vm0 = vcmask 1043456  }
  0x13   :  { %259 = vmatprep.mubr.f32.mxu1 %v950_v0  ;;  %150 = vmatprep.mubr.f32.mxu0 %v950_v0  ;;  %v65_v3 = vld [vmem:[%s1273_s4] sm:$0xff]  ;;  %v806_v4 = vpack.c.bf16 %v68_v2, %v66_v1  ;;  %v67_v5 = vld [vmem:[%s1273_s4 + $0x10] sm:$0xff]  ;;  %v70_v6 = vld [vmem:[%s1273_s4 + $0x28] sm:$0xff]  ;;  %vm177_vm1 = vcmask 31744   ;;  %vm73_vm2 = vcmask 261120   ;;  %vm487_vm3 = vcmask 64512  }
  0x14   :  { %v72_v7 = vld [vmem:[%s1273_s4 + $0x38] sm:$0xff]  ;;  %v808_v8 = vpack.c.bf16 %v67_v5, %v65_v3  ;;  %v69_v10 = vld [vmem:[%s1273_s4 + $0x20] sm:$0xff]  ;;  %v71_v11 = vld [vmem:[%s1273_s4 + $0x30] sm:$0xff]  ;;  %vm737_vm4 = vcmask 130048  }
  0x15   :  { %v810_v9 = vpack.c.bf16 %v72_v7, %v70_v6  ;;  %v64_v12 = vld [vmem:[%s1272_s3] sm:$0xff]  ;;  %807 = vmatprep.subr.bf16.mxu0 %v806_v4  ;;  %v812_v14 = vpack.c.bf16 %v71_v11, %v69_v10  ;;  %v313_v16 = vld [vmem:[#allocation2 + $0x8] sm:$0xff]  ;;  %v315_v17 = vld [vmem:[#allocation2 + $0x18] sm:$0xff] }
  0x16   :  { %v176_v13 = vcombine.high %v64_v12, %v64_v12  ;;  %809 = vmatpush1.bf16.msra.mxu0 %v808_v8  ;;  %v52_v15 = vld [vmem:[%s1269_s0] sm:$0xff]  ;;  %v314_v19 = vld [vmem:[#allocation2 + $0x10] sm:$0xff]  ;;  %v814_v20 = vpack.c.bf16 %v315_v17, %v313_v16  ;;  %v317_v22 = vld [vmem:[#allocation2 + $0x28] sm:$0xff] }
  0x17   :  { %811 = vmatprep.subr.bf16.mxu0 %v810_v9  ;;  %v312_v18 = vld [vmem:[#allocation2] sm:$0xff]  ;;  %v319_v23 = vld [vmem:[#allocation2 + $0x38] sm:$0xff]  ;;  %v53_v26 = vld [vmem:[%s1269_s0 + $0x8] sm:$0xff] }
  0x18   :  { %751 = vmatprep.subr.msk.mxu1 %vm190_vm0, %v176_v13  ;;  %v816_v21 = vpack.c.bf16 %v314_v19, %v312_v18  ;;  %v316_v24 = vld [vmem:[#allocation2 + $0x20] sm:$0xff]  ;;  %v318_v27 = vld [vmem:[#allocation2 + $0x30] sm:$0xff]  ;;  %v818_v28 = vpack.c.bf16 %v319_v23, %v317_v22  ;;  %v321_v30 = vld [vmem:[#allocation2 + $0x48] sm:$0xff] }
  0x19   :  { %752 = vmatpush1.msk.msra.mxu1 %vm190_vm0, %v64_v12  ;;  %v56_v25 = vld [vmem:[%s1270_s1] sm:$0xff]  ;;  %v820_v29 = vpack.c.bf16 %v318_v27, %v316_v24  ;;  %v323_v31 = vld [vmem:[#allocation2 + $0x58] sm:$0xff]  ;;  %v322_v33 = vld [vmem:[#allocation2 + $0x50] sm:$0xff] }
  0x1a   :  { %753 = vmatmul.mubr.msk.f32.vlgmr.msra.gmra.mrb[0].mxu1 %vm177_vm1, %v52_v15  ;;  %813 = vmatpush1.bf16.msra.mxu0 %v812_v14  ;;  %v320_v32 = vld [vmem:[#allocation2 + $0x40] sm:$0xff]  ;;  %v57_v34 = vld [vmem:[%s1270_s1 + $0x8] sm:$0xff]  ;;  %v54_v35 = vld [vmem:[%s1269_s0 + $0x10] sm:$0xff]  ;;  %v822_v36 = vpack.c.bf16 %v323_v31, %v321_v30 }
  0x1b   :  { %265 = vmatprep.mubr.f32.mxu1 %v950_v0  ;;  %815 = vmatprep.subr.bf16.mxu1 %v814_v20  ;;  %v325_v37 = vld [vmem:[#allocation2 + $0x68] sm:$0xff]  ;;  %v327_v38 = vld [vmem:[#allocation2 + $0x78] sm:$0xff]  ;;  %v824_v39 = vpack.c.bf16 %v322_v33, %v320_v32  ;;  %v58_v40 = vld [vmem:[%s1270_s1 + $0x10] sm:$0xff] }
  0x1c   :  { %817 = vmatpush1.bf16.msra.mxu1 %v816_v21  ;;  %v324_v41 = vld [vmem:[#allocation2 + $0x60] sm:$0xff]  ;;  %v326_v42 = vld [vmem:[#allocation2 + $0x70] sm:$0xff]  ;;  %v55_v43 = vld [vmem:[%s1269_s0 + $0x18] sm:$0xff]  ;;  %v826_v44 = vpack.c.bf16 %v327_v38, %v325_v37 }
  0x1d   :  { %747 = vmatmul.mubr.msk.f32.vlgmr.msra.gmra.mrb[0].mxu0 %vm73_vm2, %v56_v25  ;;  %819 = vmatprep.subr.bf16.mxu1 %v818_v28  ;;  %v329_v45 = vld [vmem:[#allocation2 + $0x88] sm:$0xff]  ;;  %v331_v46 = vld [vmem:[#allocation2 + $0x98] sm:$0xff]  ;;  %v828_v47 = vpack.c.bf16 %v326_v42, %v324_v41  ;;  %v328_v49 = vld [vmem:[#allocation2 + $0x80] sm:$0xff] }
  0x1e   :  { %754 = vmatmul.mubr.msk.f32.gmra.mrb[2].mxu1 %vm177_vm1, %v53_v26  ;;  %156 = vmatprep.mubr.f32.mxu0 %v950_v0  ;;  %v830_v48 = vpack.c.bf16 %v331_v46, %v329_v45  ;;  %v330_v50 = vld [vmem:[#allocation2 + $0x90] sm:$0xff]  ;;  %v59_v51 = vld [vmem:[%s1270_s1 + $0x18] sm:$0xff]  ;;  %v333_v52 = vld [vmem:[#allocation2 + $0xa8] sm:$0xff] }
  0x1f   :  { %271 = vmatprep.mubr.f32.mxu1 %v950_v0  ;;  %v335_v53 = vld [vmem:[#allocation2 + $0xb8] sm:$0xff]  ;;  %v832_v54 = vpack.c.bf16 %v330_v50, %v328_v49  ;;  %v332_v56 = vld [vmem:[#allocation2 + $0xa0] sm:$0xff]  ;;  %v334_v57 = vld [vmem:[#allocation2 + $0xb0] sm:$0xff] }
  0x20   :  { %821 = vmatpush1.bf16.msra.mxu1 %v820_v29  ;;  %v834_v55 = vpack.c.bf16 %v335_v53, %v333_v52  ;;  %v486_v58 = vld [vmem:[%s1277_s8 + $0x8] sm:$0xff]  ;;  %v339_v60 = vld [vmem:[#allocation2 + $0xd8] sm:$0xff]  ;;  %v485_v61 = vld [vmem:[%s1277_s8] sm:$0xff]  ;;  %v836_v62 = vpack.c.bf16 %v334_v57, %v332_v56 }
  0x21   :  { %748 = vmatmul.mubr.msk.f32.gmra.mrb[2].mxu0 %vm73_vm2, %v57_v34  ;;  %823 = vmatprep.subr.bf16.mxu1 %v822_v36  ;;  %v337_v59 = vld [vmem:[#allocation2 + $0xc8] sm:$0xff]  ;;  %v336_v1 = vld [vmem:[#allocation2 + $0xc0] sm:$0xff]  ;;  %v338_v2 = vld [vmem:[#allocation2 + $0xd0] sm:$0xff] }
  0x22   :  { %755 = vmatmul.mubr.msk.f32.gmra.mrb[4].mxu1 %vm177_vm1, %v54_v35  ;;  %162 = vmatprep.mubr.f32.mxu0 %v950_v0  ;;  %v838_v63 = vpack.c.bf16 %v339_v60, %v337_v59  ;;  %v341_v3 = vld [vmem:[#allocation2 + $0xe8] sm:$0xff]  ;;  %v343_v4 = vld [vmem:[#allocation2 + $0xf8] sm:$0xff]  ;;  %v840_v5 = vpack.c.bf16 %v338_v2, %v336_v1  ;;  %v340_v7 = vld [vmem:[#allocation2 + $0xe0] sm:$0xff] }
  0x23   :  { %277 = vmatprep.mubr.f32.mxu1 %v950_v0  ;;  %500 = vmatprep.subr.mxu0 %v486_v58  ;;  %v842_v6 = vpack.c.bf16 %v343_v4, %v341_v3  ;;  %v342_v8 = vld [vmem:[#allocation2 + $0xf0] sm:$0xff]  ;;  %v345_v9 = vld [vmem:[#allocation2 + $0x108] sm:$0xff]  ;;  %v347_v10 = vld [vmem:[#allocation2 + $0x118] sm:$0xff] }
  0x24   :  { %825 = vmatpush1.bf16.msra.mxu1 %v824_v39  ;;  %501 = vmatpush1.msra.mxu0 %v485_v61  ;;  %v844_v11 = vpack.c.bf16 %v342_v8, %v340_v7  ;;  %v846_v12 = vpack.c.bf16 %v347_v10, %v345_v9  ;;  %v344_v13 = vld [vmem:[#allocation2 + $0x100] sm:$0xff]  ;;  %v346_v14 = vld [vmem:[#allocation2 + $0x110] sm:$0xff]  ;;  %v349_v15 = vld [vmem:[#allocation2 + $0x128] sm:$0xff] }
  0x25   :  { %749 = vmatmul.mubr.msk.f32.gmra.mrb[4].mxu0 %vm73_vm2, %v58_v40  ;;  %827 = vmatprep.subr.bf16.mxu1 %v826_v44  ;;  %v351_v16 = vld [vmem:[#allocation2 + $0x138] sm:$0xff]  ;;  %v848_v17 = vpack.c.bf16 %v346_v14, %v344_v13  ;;  %v348_v19 = vld [vmem:[#allocation2 + $0x120] sm:$0xff]  ;;  %v350_v20 = vld [vmem:[#allocation2 + $0x130] sm:$0xff] }
  0x26   :  { %756 = vmatmul.mubr.msk.f32.gmra.mrb[6].mxu1 %vm177_vm1, %v55_v43  ;;  %168 = vmatprep.mubr.f32.mxu0 %v950_v0  ;;  %v850_v18 = vpack.c.bf16 %v351_v16, %v349_v15  ;;  %v353_v21 = vld [vmem:[#allocation2 + $0x148] sm:$0xff]  ;;  %v355_v22 = vld [vmem:[#allocation2 + $0x158] sm:$0xff]  ;;  %v852_v23 = vpack.c.bf16 %v350_v20, %v348_v19  ;;  %v352_v25 = vld [vmem:[#allocation2 + $0x140] sm:$0xff] }
  0x27   :  { %v854_v24 = vpack.c.bf16 %v355_v22, %v353_v21  ;;  %v354_v26 = vld [vmem:[#allocation2 + $0x150] sm:$0xff]  ;;  %v357_v27 = vld [vmem:[#allocation2 + $0x168] sm:$0xff]  ;;  %v359_v28 = vld [vmem:[#allocation2 + $0x178] sm:$0xff] }
  0x28   :  { %829 = vmatpush1.bf16.msra.mxu1 %v828_v47  ;;  %v856_v29 = vpack.c.bf16 %v354_v26, %v352_v25  ;;  %v858_v30 = vpack.c.bf16 %v359_v28, %v357_v27  ;;  %v356_v31 = vld [vmem:[#allocation2 + $0x160] sm:$0xff]  ;;  %v358_v32 = vld [vmem:[#allocation2 + $0x170] sm:$0xff]  ;;  %v361_v33 = vld [vmem:[#allocation2 + $0x188] sm:$0xff] }
  0x29   :  { %750 = vmatmul.mubr.msk.f32.gmra.mrb[6].mxu0 %vm73_vm2, %v59_v51  ;;  %831 = vmatprep.subr.bf16.mxu1 %v830_v48  ;;  %v363_v34 = vld [vmem:[#allocation2 + $0x198] sm:$0xff]  ;;  %v860_v35 = vpack.c.bf16 %v358_v32, %v356_v31  ;;  %v360_v37 = vld [vmem:[#allocation2 + $0x180] sm:$0xff]  ;;  %v362_v38 = vld [vmem:[#allocation2 + $0x190] sm:$0xff] }
  0x2a   :  { %564 = vmatprep.mubr.f32.mxu0 %v950_v0  ;;  %v862_v36 = vpack.c.bf16 %v363_v34, %v361_v33  ;;  %v365_v39 = vld [vmem:[#allocation2 + $0x1a8] sm:$0xff]  ;;  %v367_v40 = vld [vmem:[#allocation2 + $0x1b8] sm:$0xff]  ;;  %v864_v41 = vpack.c.bf16 %v362_v38, %v360_v37  ;;  %v364_v43 = vld [vmem:[#allocation2 + $0x1a0] sm:$0xff]  ;;  %v286_v34 = vlaneseq }
  0x2b   :  { %v866_v42 = vpack.c.bf16 %v367_v40, %v365_v39  ;;  %v366_v44 = vld [vmem:[#allocation2 + $0x1b0] sm:$0xff]  ;;  %v369_v46 = vld [vmem:[#allocation2 + $0x1c8] sm:$0xff]  ;;  %v371_v47 = vld [vmem:[#allocation2 + $0x1d8] sm:$0xff] }
  0x2c   :  { %833 = vmatpush1.bf16.msra.mxu1 %v832_v54  ;;  %v868_v45 = vpack.c.bf16 %v366_v44, %v364_v43  ;;  %v870_v48 = vpack.c.bf16 %v371_v47, %v369_v46  ;;  %v368_v49 = vld [vmem:[#allocation2 + $0x1c0] sm:$0xff]  ;;  %v370_v50 = vld [vmem:[#allocation2 + $0x1d0] sm:$0xff]  ;;  %v373_v52 = vld [vmem:[#allocation2 + $0x1e8] sm:$0xff] }
  0x2d   :  { %835 = vmatprep.subr.bf16.mxu1 %v834_v55  ;;  %v872_v51 = vpack.c.bf16 %v370_v50, %v368_v49  ;;  %v375_v53 = vld [vmem:[#allocation2 + $0x1f8] sm:$0xff]  ;;  %v372_v55 = vld [vmem:[#allocation2 + $0x1e0] sm:$0xff]  ;;  %v374_v56 = vld [vmem:[#allocation2 + $0x1f0] sm:$0xff] }
  0x2e   :  { %v874_v54 = vpack.c.bf16 %v375_v53, %v373_v52  ;;  %v876_v57 = vpack.c.bf16 %v374_v56, %v372_v55  ;;  %v1100_v58 = vld [vmem:[%s1271_s2] sm:$0xff]  ;;  %v1108_v59 = vld [vmem:[%s1271_s2 + $0x8] sm:$0xff]  ;;  %v1116_v60 = vld [vmem:[%s1271_s2 + $0x10] sm:$0xff] }
  0x2f   :  { %757 = vmatmul.mubr.msk.f32.vlgmr.msra.gmra.mrb[8].mxu0 %vm487_vm3, %v1100_v58  ;;  %v1124_v61 = vld [vmem:[%s1271_s2 + $0x18] sm:$0xff]  ;;  %v597_v2 = vld [vmem:[%s1278_s9] sm:$0xff]  ;;  %v615_v3 = vld [vmem:[%s1278_s9 + $0x90] sm:$0xff] }
  0x30   :  { %837 = vmatpush1.bf16.msra.mxu1 %v836_v62  ;;  %570 = vmatprep.mubr.f32.mxu0 %v950_v0  ;;  %v613_v62 = vld [vmem:[%s1278_s9 + $0x80] sm:$0xff]  ;;  %v600_v7 = vld [vmem:[%s1278_s9 + $0x18] sm:$0xff]  ;;  %v618_v10 = vld [vmem:[%s1278_s9 + $0xa8] sm:$0xff] }
  0x31   :  { %839 = vmatprep.subr.bf16.mxu1 %v838_v63  ;;  %v614_v63 = vld [vmem:[%s1278_s9 + $0x88] sm:$0xff]  ;;  %v617_v9 = vld [vmem:[%s1278_s9 + $0xa0] sm:$0xff]  ;;  %v619_v15 = vld [vmem:[%s1278_s9 + $0xb0] sm:$0xff] }
  0x32   :  { %v878_v1 = vpack.c.bf16 %v614_v63, %v613_v62  ;;  %v601_v13 = vld [vmem:[%s1278_s9 + $0x20] sm:$0xff]  ;;  %v602_v14 = vld [vmem:[%s1278_s9 + $0x28] sm:$0xff]  ;;  %v620_v16 = vld [vmem:[%s1278_s9 + $0xb8] sm:$0xff] }
  0x33   :  { %758 = vmatmul.mubr.msk.f32.gmra.mrb[10].mxu0 %vm487_vm3, %v1108_v59  ;;  %v603_v19 = vld [vmem:[%s1278_s9 + $0x30] sm:$0xff]  ;;  %v604_v20 = vld [vmem:[%s1278_s9 + $0x38] sm:$0xff]  ;;  %v621_v21 = vld [vmem:[%s1278_s9 + $0xc0] sm:$0xff] }
  0x34   :  { %841 = vmatpush1.bf16.msra.mxu1 %v840_v5  ;;  %576 = vmatprep.mubr.f32.mxu0 %v950_v0  ;;  %v616_v5 = vld [vmem:[%s1278_s9 + $0x98] sm:$0xff]  ;;  %v622_v22 = vld [vmem:[%s1278_s9 + $0xc8] sm:$0xff]  ;;  %v605_v25 = vld [vmem:[%s1278_s9 + $0x40] sm:$0xff] }
  0x35   :  { %843 = vmatprep.subr.bf16.mxu1 %v842_v6  ;;  %v599_v6 = vld [vmem:[%s1278_s9 + $0x10] sm:$0xff]  ;;  %879 = vmatprep.subr.bf16.mxu0 %v878_v1  ;;  %v882_v8 = vpack.c.bf16 %v616_v5, %v615_v3  ;;  %v606_v26 = vld [vmem:[%s1278_s9 + $0x48] sm:$0xff]  ;;  %v624_v28 = vld [vmem:[%s1278_s9 + $0xd8] sm:$0xff] }
  0x36   :  { %v623_v27 = vld [vmem:[%s1278_s9 + $0xd0] sm:$0xff]  ;;  %v608_v32 = vld [vmem:[%s1278_s9 + $0x58] sm:$0xff]  ;;  %v284_v38 = vld [vmem:[%s1274_s5] sm:$0x3] }
  0x37   :  { %759 = vmatmul.mubr.msk.f32.gmra.mrb[12].mxu0 %vm487_vm3, %v1116_v60  ;;  %v607_v31 = vld [vmem:[%s1278_s9 + $0x50] sm:$0xff] }
  0x38   :  { %845 = vmatpush1.bf16.msra.mxu1 %v844_v11  ;;  %582 = vmatprep.mubr.f32.mxu0 %v950_v0  ;;  %v598_v0 = vld [vmem:[%s1278_s9 + $0x8] sm:$0xff]  ;;  %v884_v11 = vpack.c.bf16 %v600_v7, %v599_v6  ;;  %v900_v33 = vpack.c.bf16 %v608_v32, %v607_v31  ;;  %v611_v31 = vld [vmem:[%s1278_s9 + $0x70] sm:$0xff]  ;;  %v612_v32 = vld [vmem:[%s1278_s9 + $0x78] sm:$0xff] }
  0x39   :  { %847 = vmatprep.subr.bf16.mxu1 %v846_v12  ;;  %v880_v4 = vpack.c.bf16 %v598_v0, %v597_v2  ;;  %v886_v12 = vpack.c.bf16 %v618_v10, %v617_v9 }
  0x3b   :  { %760 = vmatmul.mubr.msk.f32.gmra.mrb[14].mxu0 %vm487_vm3, %v1124_v61 }
  0x3c   :  { %849 = vmatpush1.bf16.msra.mxu1 %v848_v17  ;;  %881 = vmatpush3.bf16.msra.mxu0 %v880_v4  ;;  %v888_v17 = vpack.c.bf16 %v602_v14, %v601_v13 }
  0x3d   :  { %851 = vmatprep.subr.bf16.mxu1 %v850_v18  ;;  %883 = vmatprep.subr.bf16.mxu0 %v882_v8  ;;  %v890_v18 = vpack.c.bf16 %v620_v16, %v619_v15 }
  0x40   :  { %853 = vmatpush1.bf16.msra.mxu1 %v852_v23  ;;  %885 = vmatpush3.bf16.msra.mxu0 %v884_v11  ;;  %v892_v23 = vpack.c.bf16 %v604_v20, %v603_v19 }
  0x41   :  { %855 = vmatprep.subr.bf16.mxu1 %v854_v24  ;;  %887 = vmatprep.subr.bf16.mxu0 %v886_v12  ;;  %v894_v24 = vpack.c.bf16 %v622_v22, %v621_v21  ;;  %v625_v21 = vld [vmem:[%s1278_s9 + $0xe0] sm:$0xff]  ;;  %v626_v22 = vld [vmem:[%s1278_s9 + $0xe8] sm:$0xff] }
  0x44   :  { %857 = vmatpush1.bf16.msra.mxu1 %v856_v29  ;;  %889 = vmatpush3.bf16.msra.mxu0 %v888_v17  ;;  %v896_v29 = vpack.c.bf16 %v606_v26, %v605_v25  ;;  %v610_v25 = vld [vmem:[%s1278_s9 + $0x68] sm:$0xff] }
  0x45   :  { %859 = vmatprep.subr.bf16.mxu1 %v858_v30  ;;  %891 = vmatprep.subr.bf16.mxu0 %v890_v18  ;;  %v898_v30 = vpack.c.bf16 %v624_v28, %v623_v27  ;;  %v627_v27 = vld [vmem:[%s1278_s9 + $0xf0] sm:$0xff]  ;;  %v628_v28 = vld [vmem:[%s1278_s9 + $0xf8] sm:$0xff] }
  0x48   :  { %861 = vmatpush1.bf16.msra.mxu1 %v860_v35  ;;  %893 = vmatpush3.bf16.msra.mxu0 %v892_v23  ;;  %v1200_v35 = vshrl.u32 %v286_v34, 7  ;;  %v902_v23 = vpack.c.bf16 %v626_v22, %v625_v21  ;;  %v908_v34 = vpack.c.bf16 %v612_v32, %v611_v31 }
  0x49   :  { %863 = vmatprep.subr.bf16.mxu1 %v862_v36  ;;  %895 = vmatprep.subr.bf16.mxu0 %v894_v24  ;;  %v609_v24 = vld [vmem:[%s1278_s9 + $0x60] sm:$0xff] }
  0x4a   :  { %v288_v36 = vsub.s32 0, %v1200_v35  ;;  %v292_v39 = vsub.s32 1, %v1200_v35  ;;  %v904_v26 = vpack.c.bf16 %v610_v25, %v609_v24 }
  0x4c   :  { %865 = vmatpush1.bf16.msra.mxu1 %v864_v41  ;;  %897 = vmatpush3.bf16.msra.mxu0 %v896_v29  ;;  %v289_v41 = vrot.slane %v284_v38, %v288_v36  ;;  %v293_v43 = vrot.slane %v284_v38, %v292_v39 }
  0x4d   :  { %867 = vmatprep.subr.bf16.mxu1 %v866_v42  ;;  %899 = vmatprep.subr.bf16.mxu0 %v898_v30  ;;  %v906_v30 = vpack.c.bf16 %v628_v28, %v627_v27 }
  0x50   :  { %869 = vmatpush1.bf16.msra.mxu1 %v868_v45  ;;  %901 = vmatpush3.bf16.msra.mxu0 %v900_v33 }
  0x51   :  { %871 = vmatprep.subr.bf16.mxu1 %v870_v48  ;;  %903 = vmatprep.subr.bf16.mxu0 %v902_v23 }
  0x54   :  { %873 = vmatpush1.bf16.msra.mxu1 %v872_v51  ;;  %905 = vmatpush3.bf16.msra.mxu0 %v904_v26 }
  0x55   :  { %875 = vmatprep.subr.bf16.mxu1 %v874_v54  ;;  %907 = vmatprep.subr.bf16.mxu0 %v906_v30 }
  0x58   :  { %877 = vmatpush1.bf16.msra.mxu1 %v876_v57  ;;  %909 = vmatpush3.bf16.msra.mxu0 %v908_v34 }
  0xed   :  { %v261_v37 = vpop.f32.mrb[0].mxu1 }
  0xee   :  { %v263_v40 = vpop.f32.mrb[1].mxu1 }
  0xf0   :  { %v152_v42 = vpop.f32.mrb[0].mxu0 }
  0xf1   :  { %v267_v44 = vpop.f32.mrb[2].mxu1  ;;  %v262_v45 = vadd.f32 %v261_v37, %v152_v42  ;;  %v154_v46 = vpop.f32.mrb[1].mxu0 }
  0xf2   :  { %v269_v47 = vpop.f32.mrb[3].mxu1  ;;  %v264_v48 = vadd.f32 %v263_v40, %v154_v46  ;;  %v632_v46 = vsel %vm487_vm3, %v1108_v59, 0.0 }
  0xf3   :  { %v296_v49 = vadd.f32 %v289_v41, %v262_v45  ;;  %v635_v45 = vsel %vm487_vm3, %v1116_v60, 0.0 }
  0xf4   :  { %v297_v50 = vadd.f32 %v293_v43, %v264_v48  ;;  %v158_v51 = vpop.f32.mrb[2].mxu0  ;;  %636 = vadd.xlane.f32.xlu1 %v635_v45  ;;  %v376_v48 = vld [vmem:[%s1276_s7] sm:$0x3] }
  0xf5   :  { %v273_v52 = vpop.f32.mrb[4].mxu1  ;;  %v268_v53 = vadd.f32 %v267_v44, %v158_v51  ;;  %v160_v54 = vpop.f32.mrb[3].mxu0  ;;  %v304_v62 = vmax.f32 %v296_v49, 0.0  ;;  %v629_v44 = vsel %vm487_vm3, %v1100_v58, 0.0  ;;  %v381_v58 = vrot.slane %v376_v48, %v288_v36 }
  0xf6   :  { %v275_v55 = vpop.f32.mrb[5].mxu1  ;;  %v305_v56 = vmax.f32 %v297_v50, 0.0  ;;  %v270_v57 = vadd.f32 %v269_v47, %v160_v54  ;;  %630 = vadd.xlane.f32.xlu0 %v629_v44  ;;  %v638_v47 = vsel %vm487_vm3, %v1124_v61, 0.0  ;;  %v385_v60 = vrot.slane %v376_v48, %v292_v39 }
  0xf7   :  { %v298_v63 = vadd.f32 %v289_v41, %v268_v53 }
  0xf8   :  { %v299_v1 = vadd.f32 %v293_v43, %v270_v57  ;;  %v164_v2 = vpop.f32.mrb[4].mxu0  ;;  %452 = vmatprep.mubr.f32.mxu1 %v305_v56  ;;  %639 = vadd.xlane.f32.xlu1 %v638_v47 }
  0xf9   :  { %v279_v0 = vpop.f32.mrb[6].mxu1  ;;  %v274_v3 = vadd.f32 %v273_v52, %v164_v2  ;;  %v166_v4 = vpop.f32.mrb[5].mxu0  ;;  %453 = vmatmul.mubr.f32.vlgmr.msra.gmra.mrb[8].mxu1 %v304_v62  ;;  %v306_v8 = vmax.f32 %v298_v63, 0.0 }
  0xfa   :  { %v281_v5 = vpop.f32.mrb[7].mxu1  ;;  %v307_v6 = vmax.f32 %v299_v1, 0.0  ;;  %v276_v7 = vadd.f32 %v275_v55, %v166_v4  ;;  %633 = vadd.xlane.f32.xlu0 %v632_v46 }
  0xfb   :  { %v300_v9 = vadd.f32 %v289_v41, %v274_v3 }
  0xfc   :  { %v301_v10 = vadd.f32 %v293_v43, %v276_v7  ;;  %v170_v11 = vpop.f32.mrb[6].mxu0  ;;  %458 = vmatprep.mubr.f32.mxu1 %v307_v6 }
  0xfd   :  { %v280_v12 = vadd.f32 %v279_v0, %v170_v11  ;;  %v172_v13 = vpop.f32.mrb[7].mxu0  ;;  %459 = vmatmul.mubr.f32.gmra.mrb[10].mxu1 %v306_v8  ;;  %v308_v16 = vmax.f32 %v300_v9, 0.0 }
  0xfe   :  { %v309_v14 = vmax.f32 %v301_v10, 0.0  ;;  %v282_v15 = vadd.f32 %v281_v5, %v172_v13 }
  0xff   :  { %v302_v17 = vadd.f32 %v289_v41, %v280_v12 }
 0x100   :  { %v303_v18 = vadd.f32 %v293_v43, %v282_v15  ;;  %464 = vmatprep.mubr.f32.mxu1 %v309_v14 }
 0x101   :  { %465 = vmatmul.mubr.f32.gmra.mrb[12].mxu1 %v308_v16  ;;  %v310_v20 = vmax.f32 %v302_v17, 0.0  ;;  %v761_v17 = vld [vmem:[%s1279_s10] ss:$0 sm:$0xff] }
 0x102   :  { %v311_v19 = vmax.f32 %v303_v18, 0.0  ;;  %v566_v29 = vpop.f32.mrb[8].mxu0 }
 0x103   :  { %v568_v33 = vpop.f32.mrb[9].mxu0 }
 0x104   :  { %470 = vmatprep.mubr.f32.mxu1 %v311_v19 }
 0x105   :  { %471 = vmatmul.mubr.f32.gmra.mrb[14].mxu1 %v310_v20 }
 0x106   :  { %v572_v37 = vpop.f32.mrb[10].mxu0 }
 0x107   :  { %v574_v38 = vpop.f32.mrb[11].mxu0 }
 0x10a   :  { %v578_v40 = vpop.f32.mrb[12].mxu0 }
 0x10b   :  { %v580_v41 = vpop.f32.mrb[13].mxu0 }
 0x10e   :  { %v584_v42 = vpop.f32.mrb[14].mxu0 }
 0x10f   :  { %v586_v43 = vpop.f32.mrb[15].mxu0 }
 0x181   :  { %v637_v23 = vpop.xlane.xlu1 %636 }
 0x182   :  { %v650_v31 = vmul.f32 %v761_v17, %v637_v23 }
 0x183   :  { %v631_v16 = vpop.xlane.xlu0 %630 }
 0x184   :  { %v648_v19 = vmul.f32 %v761_v17, %v631_v16 }
 0x187   :  { %v634_v21 = vpop.xlane.xlu0 %633 }
 0x188   :  { %v649_v26 = vmul.f32 %v761_v17, %v634_v21 }
 0x1cc   :  { %v454_v49 = vpop.f32.mrb[8].mxu1 }
 0x1cd   :  { %v455_v50 = vadd.f32 %v454_v49, %v381_v58  ;;  %v456_v51 = vpop.f32.mrb[9].mxu1 }
 0x1ce   :  { %v457_v52 = vadd.f32 %v456_v51, %v385_v60 }
 0x1cf   :  { %v477_v59 = vmax.f32 %v455_v50, 0.0 }
 0x1d0   :  { %v478_v53 = vmax.f32 %v457_v52, 0.0  ;;  %v460_v54 = vpop.f32.mrb[10].mxu1 }
 0x1d1   :  { %v589_v61 = vmul.f32 %v566_v29, %v477_v59  ;;  %v461_v55 = vadd.f32 %v460_v54, %v381_v58  ;;  %v462_v56 = vpop.f32.mrb[11].mxu1 }
 0x1d2   :  { %v590_v57 = vmul.f32 %v568_v33, %v478_v53  ;;  %v463_v62 = vadd.f32 %v462_v56, %v385_v60  ;;  %v640_v33 = vpop.xlane.xlu1 %639 }
 0x1d3   :  { %v479_v63 = vmax.f32 %v461_v55, 0.0 }
 0x1d4   :  { %v480_v1 = vmax.f32 %v463_v62, 0.0  ;;  %v466_v2 = vpop.f32.mrb[12].mxu1  ;;  %716 = vmatprep.mubr.f32.mxu0 %v590_v57 }
 0x1d5   :  { %v591_v36 = vmul.f32 %v572_v37, %v479_v63  ;;  %v467_v0 = vadd.f32 %v466_v2, %v381_v58  ;;  %v468_v35 = vpop.f32.mrb[13].mxu1  ;;  %717 = vmatmul.mubr.f32.vlgmr.msra.gmra.mrb[16].mxu0 %v589_v61 }
 0x1d6   :  { %v592_v39 = vmul.f32 %v574_v38, %v480_v1  ;;  %v469_v3 = vadd.f32 %v468_v35, %v385_v60 }
 0x1d7   :  { %v481_v4 = vmax.f32 %v467_v0, 0.0 }
 0x1d8   :  { %v482_v5 = vmax.f32 %v469_v3, 0.0  ;;  %v472_v6 = vpop.f32.mrb[14].mxu1  ;;  %721 = vmatprep.mubr.f32.mxu0 %v592_v39 }
 0x1d9   :  { %v593_v7 = vmul.f32 %v578_v40, %v481_v4  ;;  %v473_v8 = vadd.f32 %v472_v6, %v381_v58  ;;  %v474_v9 = vpop.f32.mrb[15].mxu1  ;;  %722 = vmatmul.mubr.f32.gmra.mrb[18].mxu0 %v591_v36  ;;  %v651_v40 = vmul.f32 %v761_v17, %v640_v33 }
 0x1da   :  { %v594_v10 = vmul.f32 %v580_v41, %v482_v5  ;;  %v475_v11 = vadd.f32 %v474_v9, %v385_v60 }
 0x1db   :  { %v483_v12 = vmax.f32 %v473_v8, 0.0 }
 0x1dc   :  { %v484_v13 = vmax.f32 %v475_v11, 0.0  ;;  %726 = vmatprep.mubr.f32.mxu0 %v594_v10 }
 0x1dd   :  { %v595_v14 = vmul.f32 %v584_v42, %v483_v12  ;;  %727 = vmatmul.mubr.f32.gmra.mrb[20].mxu0 %v593_v7 }
 0x1de   :  { %v596_v15 = vmul.f32 %v586_v43, %v484_v13 }
 0x1e0   :  { %731 = vmatprep.mubr.f32.mxu0 %v596_v15 }
 0x1e1   :  { %732 = vmatmul.mubr.f32.gmra.mrb[22].mxu0 %v595_v14 }
 0x2a8   :  { %v794_v18 = vpop.f32.mrb[16].mxu0 }
 0x2a9   :  { %v795_v20 = vpop.f32.mrb[17].mxu0 }
 0x2aa   :  { %v796_v22 = vadd.f32 %v795_v20, %v794_v18 }
 0x2ac   :  { %v719_v24 = vadd.f32 %v796_v22, %v648_v19  ;;  %v797_v25 = vpop.f32.mrb[18].mxu0 }
 0x2ad   :  { %v798_v27 = vpop.f32.mrb[19].mxu0 }
 0x2ae   :  { %738 = vst.msk [vmem:[%s1280_s11] sm:$0xff] %vm737_vm4, %v719_v24  ;;  %v799_v28 = vadd.f32 %v798_v27, %v797_v25 }
 0x2b0   :  { %v724_v29 = vadd.f32 %v799_v28, %v649_v26  ;;  %v800_v30 = vpop.f32.mrb[20].mxu0 }
 0x2b1   :  { %v801_v32 = vpop.f32.mrb[21].mxu0 }
 0x2b2   :  { %739 = vst.msk [vmem:[%s1280_s11 + $0x8] sm:$0xff] %vm737_vm4, %v724_v29  ;;  %v802_v34 = vadd.f32 %v801_v32, %v800_v30 }
 0x2b4   :  { %v729_v37 = vadd.f32 %v802_v34, %v650_v31  ;;  %v803_v38 = vpop.f32.mrb[22].mxu0 }
 0x2b5   :  { %v804_v41 = vpop.f32.mrb[23].mxu0 }
 0x2b6   :  { %740 = vst.msk [vmem:[%s1280_s11 + $0x10] sm:$0xff] %vm737_vm4, %v729_v37  ;;  %v805_v42 = vadd.f32 %v804_v41, %v803_v38 }
 0x2b8   :  { %v734_v43 = vadd.f32 %v805_v42, %v651_v40 }
 0x2ba   :  { %741 = vst.msk [vmem:[%s1280_s11 + $0x18] sm:$0xff] %vm737_vm4, %v734_v43 }
 0x2bb   :  { %746 = vsyncpa [#allocation3], 1 }

</bundles_post_ra>
